<compile_context>
chip_gen: v7x
topology: tpu7x:2x2x1
jax: 0.10.0
libtpu: 0.0.40
codegen_flags: <defaults>
</compile_context>

<pallas_src>
import jax
import jax.numpy as jnp
from jax.experimental import pallas as pl
from jax.experimental.pallas import tpu as pltpu


def _head_row_loss(p_ref, ta, tb, lam):
    """Per-row mixup CE contribution for one head:
       lse - (lam * logits[ta] + (1-lam) * logits[tb]),  shape (N, 1).
    (lam + (1-lam) = 1, so the lse term carries the full weight.)"""
    x = p_ref[...].astype(jnp.float32)                       # (N, C), f32 math
    n, c = x.shape
    m = jnp.max(x, axis=-1, keepdims=True)                   # (N, 1)
    lse = m + jnp.log(jnp.sum(jnp.exp(x - m), axis=-1, keepdims=True))
    col = jax.lax.broadcasted_iota(jnp.int32, (n, c), 1)
    sel = lam * jnp.where(col == ta, x, 0.0) \
        + (1.0 - lam) * jnp.where(col == tb, x, 0.0)
    picked = jnp.sum(sel, axis=-1, keepdims=True)             # ONE lane reduce
    return lse - picked                                       # (N, 1)


def _mixup_loss_kernel(lam_ref, tgt_ref, p1_ref, p2_ref, p3_ref, out_ref):
    lam = lam_ref[0]
    t = tgt_ref[...]                                          # (N, 8) int32
    r = _head_row_loss(p1_ref, t[:, 0:1], t[:, 1:2], lam)
    r = r + _head_row_loss(p2_ref, t[:, 2:3], t[:, 3:4], lam)
    r = r + _head_row_loss(p3_ref, t[:, 4:5], t[:, 5:6], lam)
    out_ref[0, 0] = jnp.mean(r)                               # single final reduce


def mixup_loss(preds, targets):
    """JAX/Pallas equivalent of MixupLoss.forward(preds, targets)."""
    preds1, preds2, preds3 = preds
    # Reproduce the exact (buggy) tuple unpacking of the PyTorch module:
    targets1, shuffled_targets1, targets2, shuffled_targets2, targets3, \
        shuffled_targets2, lam = targets

    n = preds1.shape[0]
    zeros = jnp.zeros((n,), jnp.int32)
    # Packed targets: columns = [t1a, t1b, t2a, t2b, t3a, t3b, pad, pad].
    # Per the unpacking quirk both "shuffled" columns for heads 2 and 3 are
    # targets[5] (== shuffled_targets2 after the overwrite).
    tgt = jnp.stack(
        [jnp.asarray(targets1, jnp.int32),
         jnp.asarray(shuffled_targets1, jnp.int32),
         jnp.asarray(targets2, jnp.int32),
         jnp.asarray(shuffled_targets2, jnp.int32),
         jnp.asarray(targets3, jnp.int32),
         jnp.asarray(shuffled_targets2, jnp.int32),
         zeros, zeros],
        axis=-1,
    )                                                          # (N, 8) int32

    lam_arr = jnp.asarray(lam, jnp.float32).reshape(1)

    vmem = pl.BlockSpec(memory_space=pltpu.MemorySpace.VMEM)
    smem = pl.BlockSpec(memory_space=pltpu.MemorySpace.SMEM)

    out = pl.pallas_call(
        _mixup_loss_kernel,
        out_shape=jax.ShapeDtypeStruct((1, 1), jnp.float32),
        in_specs=[smem,                  # lam
                  vmem,                  # packed targets (N, 8)
                  vmem, vmem, vmem],     # preds for the three heads
        out_specs=smem,
    )(lam_arr, tgt,
      jnp.asarray(preds1),               # native dtype; f32 cast is in-kernel
      jnp.asarray(preds2),
      jnp.asarray(preds3))
    return out[0, 0]


# ---------------------------------------------------------------------------
# Pure-JAX reference (matches the PyTorch module, including its unpacking bug)
# ---------------------------------------------------------------------------
def _ce_ref(p, t):
    lse = jax.scipy.special.logsumexp(p.astype(jnp.float32), axis=-1)
    picked = jnp.take_along_axis(p.astype(jnp.float32), t[:, None], axis=-1)[:, 0]
    return jnp.mean(lse - picked)


def _mixup_loss_ref(preds, targets):
    p1, p2, p3 = preds
    t1, st1, t2, st2, t3, st2, lam = targets   # same overwrite quirk
    return (lam * _ce_ref(p1, t1) + (1 - lam) * _ce_ref(p1, st1)
            + lam * _ce_ref(p2, t2) + (1 - lam) * _ce_ref(p2, st2)
            + lam * _ce_ref(p3, t3) + (1 - lam) * _ce_ref(p3, st2))


if __name__ == "__main__":
    key = jax.random.PRNGKey(0)
    N = 8                       # batch
    C1, C2, C3 = 16, 11, 7      # three classification heads (as in Bengali AI)

    k = jax.random.split(key, 10)
    preds1 = jax.random.normal(k[0], (N, C1), jnp.float32)
    preds2 = jax.random.normal(k[1], (N, C2), jnp.float32)
    preds3 = jax.random.normal(k[2], (N, C3), jnp.float32)

    t1  = jax.random.randint(k[3], (N,), 0, C1, jnp.int32)
    st1 = jax.random.randint(k[4], (N,), 0, C1, jnp.int32)
    t2  = jax.random.randint(k[5], (N,), 0, C2, jnp.int32)
    st2 = jax.random.randint(k[6], (N,), 0, C2, jnp.int32)
    t3  = jax.random.randint(k[7], (N,), 0, C3, jnp.int32)
    st3 = jax.random.randint(k[8], (N,), 0, C3, jnp.int32)
    lam = jnp.float32(0.7)

    preds = (preds1, preds2, preds3)
    targets = (t1, st1, t2, st2, t3, st3, lam)

    loss = jax.block_until_ready(mixup_loss(preds, targets))
    ref = jax.block_until_ready(_mixup_loss_ref(preds, targets))
    assert jnp.allclose(loss, ref, atol=1e-5, rtol=1e-5), (loss, ref)
    print("KERNEL_OK")
</pallas_src>

<mosaic_0001>
module attributes {stable_mosaic.version = 11 : i64} {
  func.func @_mixup_loss_kernel(%arg0: memref<1xf32, #tpu.memory_space<smem>>, %arg1: memref<8x8xi32, #tpu.memory_space<vmem>>, %arg2: memref<8x16xf32, #tpu.memory_space<vmem>>, %arg3: memref<8x11xf32, #tpu.memory_space<vmem>>, %arg4: memref<8x7xf32, #tpu.memory_space<vmem>>, %arg5: memref<1x1xf32, #tpu.memory_space<smem>>) attributes {dimension_semantics = [], scalar_prefetch = 0 : i64, scratch_operands = 0 : i64, tpu.core_type = #tpu.core_type<tc>} {
    %c0 = arith.constant 0 : index
    %0 = memref.load %arg0[%c0] : memref<1xf32, #tpu.memory_space<smem>>
    %c0_0 = arith.constant 0 : index
    %c0_1 = arith.constant 0 : index
    %1 = vector.load %arg1[%c0_0, %c0_1] : memref<8x8xi32, #tpu.memory_space<vmem>>, vector<8x8xi32>
    %2 = vector.extract_strided_slice %1 {offsets = [0, 0], sizes = [8, 1], strides = [1, 1]} : vector<8x8xi32> to vector<8x1xi32>
    %3 = vector.extract_strided_slice %1 {offsets = [0, 1], sizes = [8, 1], strides = [1, 1]} : vector<8x8xi32> to vector<8x1xi32>
    %c0_2 = arith.constant 0 : index
    %c0_3 = arith.constant 0 : index
    %4 = vector.load %arg2[%c0_2, %c0_3] : memref<8x16xf32, #tpu.memory_space<vmem>>, vector<8x16xf32>
    %cst = arith.constant dense<0xFF800000> : vector<8xf32>
    %5 = vector.multi_reduction <maximumf>, %4, %cst [1] : vector<8x16xf32> to vector<8xf32>
    %6 = vector.shape_cast %5 : vector<8xf32> to vector<8x1xf32>
    %7 = vector.broadcast %6 : vector<8x1xf32> to vector<8x16xf32>
    %8 = arith.subf %4, %7 : vector<8x16xf32>
    %9 = math.exp %8 : vector<8x16xf32>
    %cst_4 = arith.constant dense<0.000000e+00> : vector<8xf32>
    %10 = vector.multi_reduction <add>, %9, %cst_4 [1] : vector<8x16xf32> to vector<8xf32>
    %11 = vector.shape_cast %10 : vector<8xf32> to vector<8x1xf32>
    %12 = math.log %11 : vector<8x1xf32>
    %13 = arith.addf %6, %12 : vector<8x1xf32>
    %14 = tpu.iota {dimensions = array<i32: 1>} : vector<8x16xi32>
    %15 = vector.broadcast %2 : vector<8x1xi32> to vector<8x16xi32>
    %16 = arith.cmpi eq, %14, %15 : vector<8x16xi32>
    %cst_5 = arith.constant 0.000000e+00 : f32
    %17 = vector.broadcast %cst_5 : f32 to vector<8x16xf32>
    %18 = arith.select %16, %4, %17 : vector<8x16xi1>, vector<8x16xf32>
    %19 = vector.broadcast %0 : f32 to vector<8x16xf32>
    %20 = arith.mulf %19, %18 : vector<8x16xf32>
    %cst_6 = arith.constant 1.000000e+00 : f32
    %21 = arith.subf %cst_6, %0 : f32
    %22 = vector.broadcast %3 : vector<8x1xi32> to vector<8x16xi32>
    %23 = arith.cmpi eq, %14, %22 : vector<8x16xi32>
    %cst_7 = arith.constant 0.000000e+00 : f32
    %24 = vector.broadcast %cst_7 : f32 to vector<8x16xf32>
    %25 = arith.select %23, %4, %24 : vector<8x16xi1>, vector<8x16xf32>
    %26 = vector.broadcast %21 : f32 to vector<8x16xf32>
    %27 = arith.mulf %26, %25 : vector<8x16xf32>
    %28 = arith.addf %20, %27 : vector<8x16xf32>
    %cst_8 = arith.constant dense<0.000000e+00> : vector<8xf32>
    %29 = vector.multi_reduction <add>, %28, %cst_8 [1] : vector<8x16xf32> to vector<8xf32>
    %30 = vector.shape_cast %29 : vector<8xf32> to vector<8x1xf32>
    %31 = arith.subf %13, %30 : vector<8x1xf32>
    %32 = vector.extract_strided_slice %1 {offsets = [0, 2], sizes = [8, 1], strides = [1, 1]} : vector<8x8xi32> to vector<8x1xi32>
    %33 = vector.extract_strided_slice %1 {offsets = [0, 3], sizes = [8, 1], strides = [1, 1]} : vector<8x8xi32> to vector<8x1xi32>
    %c0_9 = arith.constant 0 : index
    %c0_10 = arith.constant 0 : index
    %34 = vector.load %arg3[%c0_9, %c0_10] : memref<8x11xf32, #tpu.memory_space<vmem>>, vector<8x11xf32>
    %cst_11 = arith.constant dense<0xFF800000> : vector<8xf32>
    %35 = vector.multi_reduction <maximumf>, %34, %cst_11 [1] : vector<8x11xf32> to vector<8xf32>
    %36 = vector.shape_cast %35 : vector<8xf32> to vector<8x1xf32>
    %37 = vector.broadcast %36 : vector<8x1xf32> to vector<8x11xf32>
    %38 = arith.subf %34, %37 : vector<8x11xf32>
    %39 = math.exp %38 : vector<8x11xf32>
    %cst_12 = arith.constant dense<0.000000e+00> : vector<8xf32>
    %40 = vector.multi_reduction <add>, %39, %cst_12 [1] : vector<8x11xf32> to vector<8xf32>
    %41 = vector.shape_cast %40 : vector<8xf32> to vector<8x1xf32>
    %42 = math.log %41 : vector<8x1xf32>
    %43 = arith.addf %36, %42 : vector<8x1xf32>
    %44 = tpu.iota {dimensions = array<i32: 1>} : vector<8x11xi32>
    %45 = vector.broadcast %32 : vector<8x1xi32> to vector<8x11xi32>
    %46 = arith.cmpi eq, %44, %45 : vector<8x11xi32>
    %cst_13 = arith.constant 0.000000e+00 : f32
    %47 = vector.broadcast %cst_13 : f32 to vector<8x11xf32>
    %48 = arith.select %46, %34, %47 : vector<8x11xi1>, vector<8x11xf32>
    %49 = vector.broadcast %0 : f32 to vector<8x11xf32>
    %50 = arith.mulf %49, %48 : vector<8x11xf32>
    %cst_14 = arith.constant 1.000000e+00 : f32
    %51 = arith.subf %cst_14, %0 : f32
    %52 = vector.broadcast %33 : vector<8x1xi32> to vector<8x11xi32>
    %53 = arith.cmpi eq, %44, %52 : vector<8x11xi32>
    %cst_15 = arith.constant 0.000000e+00 : f32
    %54 = vector.broadcast %cst_15 : f32 to vector<8x11xf32>
    %55 = arith.select %53, %34, %54 : vector<8x11xi1>, vector<8x11xf32>
    %56 = vector.broadcast %51 : f32 to vector<8x11xf32>
    %57 = arith.mulf %56, %55 : vector<8x11xf32>
    %58 = arith.addf %50, %57 : vector<8x11xf32>
    %cst_16 = arith.constant dense<0.000000e+00> : vector<8xf32>
    %59 = vector.multi_reduction <add>, %58, %cst_16 [1] : vector<8x11xf32> to vector<8xf32>
    %60 = vector.shape_cast %59 : vector<8xf32> to vector<8x1xf32>
    %61 = arith.subf %43, %60 : vector<8x1xf32>
    %62 = arith.addf %31, %61 : vector<8x1xf32>
    %63 = vector.extract_strided_slice %1 {offsets = [0, 4], sizes = [8, 1], strides = [1, 1]} : vector<8x8xi32> to vector<8x1xi32>
    %64 = vector.extract_strided_slice %1 {offsets = [0, 5], sizes = [8, 1], strides = [1, 1]} : vector<8x8xi32> to vector<8x1xi32>
    %c0_17 = arith.constant 0 : index
    %c0_18 = arith.constant 0 : index
    %65 = vector.load %arg4[%c0_17, %c0_18] : memref<8x7xf32, #tpu.memory_space<vmem>>, vector<8x7xf32>
    %cst_19 = arith.constant dense<0xFF800000> : vector<8xf32>
    %66 = vector.multi_reduction <maximumf>, %65, %cst_19 [1] : vector<8x7xf32> to vector<8xf32>
    %67 = vector.shape_cast %66 : vector<8xf32> to vector<8x1xf32>
    %68 = vector.broadcast %67 : vector<8x1xf32> to vector<8x7xf32>
    %69 = arith.subf %65, %68 : vector<8x7xf32>
    %70 = math.exp %69 : vector<8x7xf32>
    %cst_20 = arith.constant dense<0.000000e+00> : vector<8xf32>
    %71 = vector.multi_reduction <add>, %70, %cst_20 [1] : vector<8x7xf32> to vector<8xf32>
    %72 = vector.shape_cast %71 : vector<8xf32> to vector<8x1xf32>
    %73 = math.log %72 : vector<8x1xf32>
    %74 = arith.addf %67, %73 : vector<8x1xf32>
    %75 = tpu.iota {dimensions = array<i32: 1>} : vector<8x7xi32>
    %76 = vector.broadcast %63 : vector<8x1xi32> to vector<8x7xi32>
    %77 = arith.cmpi eq, %75, %76 : vector<8x7xi32>
    %cst_21 = arith.constant 0.000000e+00 : f32
    %78 = vector.broadcast %cst_21 : f32 to vector<8x7xf32>
    %79 = arith.select %77, %65, %78 : vector<8x7xi1>, vector<8x7xf32>
    %80 = vector.broadcast %0 : f32 to vector<8x7xf32>
    %81 = arith.mulf %80, %79 : vector<8x7xf32>
    %cst_22 = arith.constant 1.000000e+00 : f32
    %82 = arith.subf %cst_22, %0 : f32
    %83 = vector.broadcast %64 : vector<8x1xi32> to vector<8x7xi32>
    %84 = arith.cmpi eq, %75, %83 : vector<8x7xi32>
    %cst_23 = arith.constant 0.000000e+00 : f32
    %85 = vector.broadcast %cst_23 : f32 to vector<8x7xf32>
    %86 = arith.select %84, %65, %85 : vector<8x7xi1>, vector<8x7xf32>
    %87 = vector.broadcast %82 : f32 to vector<8x7xf32>
    %88 = arith.mulf %87, %86 : vector<8x7xf32>
    %89 = arith.addf %81, %88 : vector<8x7xf32>
    %cst_24 = arith.constant dense<0.000000e+00> : vector<8xf32>
    %90 = vector.multi_reduction <add>, %89, %cst_24 [1] : vector<8x7xf32> to vector<8xf32>
    %91 = vector.shape_cast %90 : vector<8xf32> to vector<8x1xf32>
    %92 = arith.subf %74, %91 : vector<8x1xf32>
    %93 = arith.addf %62, %92 : vector<8x1xf32>
    %94 = vector.shape_cast %93 : vector<8x1xf32> to vector<1x8x1xf32>
    %cst_25 = arith.constant dense<0.000000e+00> : vector<1xf32>
    %95 = vector.multi_reduction <add>, %94, %cst_25 [1, 2] : vector<1x8x1xf32> to vector<1xf32>
    %96 = vector.shape_cast %95 : vector<1xf32> to vector<1x1x1xf32>
    %97 = vector.extract %96[0, 0, 0] : f32 from vector<1x1x1xf32>
    %cst_26 = arith.constant 8.000000e+00 : f32
    %98 = arith.divf %97, %cst_26 : f32
    %c0_27 = arith.constant 0 : index
    %c0_28 = arith.constant 0 : index
    %99 = memref.load %arg5[%c0_27, %c0_28] : memref<1x1xf32, #tpu.memory_space<smem>>
    memref.store %98, %arg5[%c0_27, %c0_28] : memref<1x1xf32, #tpu.memory_space<smem>>
    return
  }
}

</mosaic_0001>

<bundles_post_ra>
// kernel: tpu_custom_call.1
= control target key start
LH: loop header
LB: loop body
LE: loop exit
PB: predicated region body
PF: predicated region fallthrough
CT: control target
= control target key end

     0   :  { %11 = vsyncpa [#allocation4], 0  ;;  %s427_s0 = inlined_call_operand.<no memory space> [shape: f32[1], index: 0, kind: input, shape index: {}]   ;;  %s428_s1 = inlined_call_operand.hbm [shape: s32[8,8], index: 1, kind: input, shape index: {}]   ;;  %s429_s2 = inlined_call_operand.hbm [shape: f32[8,16], index: 2, kind: input, shape index: {}]   ;;  %s430_s3 = inlined_call_operand.vmem [shape: f32[8,11], index: 3, kind: input, shape index: {}]   ;;  %s431_s4 = inlined_call_operand.hbm [shape: f32[8,7], index: 4, kind: input, shape index: {}]   ;;  %s432_s5 = inlined_call_operand.hbm [shape: f32[1,1], index: 5, kind: output, shape index: {}]  }
   0x1   :  { %12 = vsyncpa [#allocation7], 0 }
   0x2   :  { %13 = vsyncpa [#allocation5], 0  ;;  %s303_s18 = smov [#allocation6]   ;;  %s304_s20 = smov [#allocation3]  }
   0x3   :  { %s32_s19 = sshll.u32 %s303_s18, 4  ;;  %s22_s21 = sshll.u32 %s304_s20, 4  ;;  %s33_s19 = int_to_ptr.vmem [resolvable:$true] %s32_s19  ;;  %s23_s21 = int_to_ptr.vmem [resolvable:$true] %s22_s21 }
   0x4   :  { %s221_s24 = scalar_lea.hbm %s429_s2, 128 }
   0x5   :  { %p222_p0 = scmp.ne.s32.totalorder %s429_s2, %s221_s24  ;;  %p225_p1 = scmp.lt.u32.totalorder %s221_s24, %s429_s2 }
   0x7   :  { %p227_p2 = pnand %p225_p1, %p222_p0 }
   0x9   :  { %230 = shalt.err (!%p227_p2)
}
   0xa   :  { %s231_s29 = scalar_lea.vmem %s33_s19, 128  ;;  %p236_p4 = scmp.lt.s32.totalorder %s33_s19, %s33_s19 }
   0xb   :  { %p232_p3 = scmp.ne.s32.totalorder %s33_s19, %s231_s29  ;;  %p237_p5 = scmp.lt.s32.totalorder %s231_s29, %s231_s29 }
   0xd   :  { %p238_p6 = por %p237_p5, %p236_p4 }
   0xf   :  { %p239_p7 = pnand %p238_p6, %p232_p3 }
  0x11   :  { %242 = shalt.err (!%p239_p7)
}
  0x12   :  { %35 = dma.hbm_to_vmem [thread:$0]  %s429_s2, 128, %s33_s19, [#allocation7]  }
  0x13   :  { %s243_s9 = scalar_lea.hbm %s428_s1, 128 }
  0x14   :  { %p244_p8 = scmp.ne.s32.totalorder %s428_s1, %s243_s9  ;;  %p247_p9 = scmp.lt.u32.totalorder %s243_s9, %s428_s1 }
  0x16   :  { %p249_p10 = pnand %p247_p9, %p244_p8 }
  0x18   :  { %252 = shalt.err (!%p249_p10)
}
  0x19   :  { %s253_s14 = scalar_lea.vmem %s23_s21, 128  ;;  %p258_p12 = scmp.lt.s32.totalorder %s23_s21, %s23_s21 }
  0x1a   :  { %p254_p11 = scmp.ne.s32.totalorder %s23_s21, %s253_s14  ;;  %p259_p13 = scmp.lt.s32.totalorder %s253_s14, %s253_s14 }
  0x1c   :  { %p260_p0 = por %p259_p13, %p258_p12 }
  0x1e   :  { %p261_p1 = pnand %p260_p0, %p254_p11 }
  0x20   :  { %264 = shalt.err (!%p261_p1)
}
  0x21   :  { %25 = dma.hbm_to_vmem [thread:$0]  %s428_s1, 128, %s23_s21, [#allocation4]  }
  0x22   :  { %s305_s16 = smov [#allocation8]   ;;  %s265_s20 = scalar_lea.hbm %s431_s4, 128 }
  0x23   :  { %s44_s17 = sshll.u32 %s305_s16, 4  ;;  %p266_p2 = scmp.ne.s32.totalorder %s431_s4, %s265_s20  ;;  %s45_s17 = int_to_ptr.vmem [resolvable:$true] %s44_s17 }
  0x24   :  { %p269_p3 = scmp.lt.u32.totalorder %s265_s20, %s431_s4 }
  0x26   :  { %p271_p4 = pnand %p269_p3, %p266_p2 }
  0x28   :  { %274 = shalt.err (!%p271_p4)
}
  0x29   :  { %s275_s26 = scalar_lea.vmem %s45_s17, 128  ;;  %p280_p6 = scmp.lt.s32.totalorder %s45_s17, %s45_s17 }
  0x2a   :  { %p276_p5 = scmp.ne.s32.totalorder %s45_s17, %s275_s26  ;;  %p281_p7 = scmp.lt.s32.totalorder %s275_s26, %s275_s26 }
  0x2c   :  { %p282_p8 = por %p281_p7, %p280_p6 }
  0x2e   :  { %p283_p9 = pnand %p282_p8, %p276_p5 }
  0x30   :  { %286 = shalt.err (!%p283_p9)
}
  0x31   :  { %47 = dma.hbm_to_vmem [thread:$0]  %s431_s4, 128, %s45_s17, [#allocation7]  }
  0x32   :  { %297 = dma.done.wait [#allocation4], 128  }
  0x33   :  { %298 = vsyncadd [#allocation4], 4294967168 }
  0x34   :  { %299 = dma.done.wait [#allocation7], 256  }
  0x35   :  { %300 = vsyncadd [#allocation7], 4294967040  ;;  %v306_v0 = vmov 0   ;;  %v307_v1 = vmov 1   ;;  %vm60_vm0 = vcmask 130048   ;;  %vm128_vm1 = vcmask 56320  }
  0x36   :  { %202 = vset.pattern.permute.xlu1 %v306_v0  ;;  %203 = vset.pattern.permute.xlu0 %v307_v1  ;;  %v59_v2 = vld [vmem:[#allocation6] sm:$0xff]  ;;  %v379_v3 = vld [vmem:[#allocation8] sm:$0xff]  ;;  %v95_v4 = vld [vmem:[%s430_s3] sm:$0xff]  ;;  %vm96_vm2 = vcmask 89088   ;;  %v308_v9 = vmov 2   ;;  %v309_v10 = vmov 3   ;;  %v73_v20 = vlaneseq }
  0x37   :  { %v61_v5 = vsel %vm60_vm0, %v59_v2, -inf  ;;  %v129_v6 = vsel %vm128_vm1, %v379_v3, -inf  ;;  %v97_v7 = vsel %vm96_vm2, %v95_v4, -inf  ;;  %v58_v8 = vld [vmem:[#allocation3] sm:$0xff]  ;;  %v310_v11 = vmov 5   ;;  %s82_s29 = ssub.f32 1.0, %s427_s0 }
  0x38   :  { %62 = vmax.xlane.f32.xlu0 %v61_v5  ;;  %130 = vmax.xlane.f32.xlu1 %v129_v6  ;;  %v311_v12 = vmov 4   ;;  %v74_v24 = vand.u32 127, %v73_v20  ;;  %v80_v31 = vstv %s427_s0  ;;  %vm159_vm9 = vcmask 7168   ;;  %s287_s10 = scalar_lea.hbm %s432_s5, 16 }
  0x39   :  { %v88_v27 = vstv %s82_s29  ;;  %p288_p10 = scmp.ne.s32.totalorder %s432_s5, %s287_s10  ;;  %p291_p11 = scmp.lt.u32.totalorder %s287_s10, %s432_s5 }
  0x3b   :  { %p293_p12 = pnand %p291_p11, %p288_p10 }
  0x3c   :  { %98 = vmax.xlane.f32.xlu0 %v97_v7 }
  0x49   :  { %76 = vperm.xlu1 %202, %v58_v8  }
  0x4d   :  { %204 = vset.pattern.permute.xlu1 %v308_v9 }
  0x4e   :  { %110 = vperm.xlu1 %204, %v58_v8  }
  0x52   :  { %84 = vperm.xlu0 %203, %v58_v8   ;;  %205 = vset.pattern.permute.xlu1 %v309_v10 }
  0x53   :  { %116 = vperm.xlu1 %205, %v58_v8  }
  0x56   :  { %208 = vset.pattern.permute.xlu0 %v310_v11 }
  0x57   :  { %206 = vset.pattern.permute.xlu1 %v311_v12 }
  0x58   :  { %142 = vperm.xlu1 %206, %v58_v8  }
  0x5c   :  { %207 = vset.pattern.permute.xlu1 %v310_v11 }
  0x5d   :  { %148 = vperm.xlu1 %207, %v58_v8  }
  0xc5   :  { %v388_v13 = vpop.xlane.xlu0 %62  ;;  %v390_v14 = vpop.xlane.xlu1 %130 }
  0xc6   :  { %v64_v15 = vsub.f32 %v59_v2, %v388_v13  ;;  %v132_v16 = vsub.f32 %v379_v3, %v390_v14 }
  0xc8   :  { %v65_v17 = vmul.f32 1.442695, %v64_v15  ;;  %v133_v18 = vmul.f32 1.442695, %v132_v16 }
  0xc9   :  { %v395_v19 = vpop.xlane.xlu0 %98  ;;  %v77_v21 = vpop.permute.xlu1 %76 }
  0xca   :  { %209 = vpow2.f32 %v65_v17  ;;  %v100_v22 = vsub.f32 %v95_v4, %v395_v19  ;;  %vm78_vm3 = vcmp.eq.s32.totalorder %v74_v24, %v77_v21 }
  0xcb   :  { %211 = vpow2.f32 %v133_v18  ;;  %v79_v32 = vsel %vm78_vm3, %v59_v2, 0.0 }
  0xcc   :  { %v101_v23 = vmul.f32 1.442695, %v100_v22  ;;  %v81_v38 = vmul.f32 %v80_v31, %v79_v32 }
  0xcd   :  { %v111_v25 = vpop.permute.xlu1 %110 }
  0xce   :  { %213 = vpow2.f32 %v101_v23  ;;  %vm112_vm5 = vcmp.eq.s32.totalorder %v74_v24, %v111_v25 }
  0xcf   :  { %v113_v36 = vsel %vm112_vm5, %v95_v4, 0.0 }
  0xd0   :  { %v114_v42 = vmul.f32 %v113_v36, %v80_v31 }
  0xd1   :  { %v85_v26 = vpop.permute.xlu0 %84 }
  0xd2   :  { %vm86_vm4 = vcmp.eq.s32.totalorder %v74_v24, %v85_v26  ;;  %v117_v28 = vpop.permute.xlu1 %116 }
  0xd3   :  { %v87_v29 = vsel %vm86_vm4, %v59_v2, 0.0  ;;  %vm118_vm6 = vcmp.eq.s32.totalorder %v74_v24, %v117_v28 }
  0xd4   :  { %v210_v30 = vpop.eup %209  ;;  %v89_v34 = vmul.f32 %v88_v27, %v87_v29  ;;  %v119_v37 = vsel %vm118_vm6, %v95_v4, 0.0 }
  0xd5   :  { %v212_v33 = vpop.eup %211  ;;  %v67_v35 = vsel %vm60_vm0, %v210_v30, 0.0  ;;  %v120_v43 = vmul.f32 %v119_v37, %v88_v27 }
  0xd6   :  { %68 = vadd.xlane.f32.xlu1 %v67_v35  ;;  %v135_v39 = vsel %vm128_vm1, %v212_v33, 0.0  ;;  %v90_v45 = vadd.f32 %v89_v34, %v81_v38 }
  0xd7   :  { %v143_v40 = vpop.permute.xlu1 %142  ;;  %v121_v50 = vadd.f32 %v120_v43, %v114_v42 }
  0xd8   :  { %v214_v41 = vpop.eup %213  ;;  %vm144_vm7 = vcmp.eq.s32.totalorder %v74_v24, %v143_v40  ;;  %v91_v49 = vsel %vm60_vm0, %v90_v45, 0.0 }
  0xd9   :  { %v103_v44 = vsel %vm96_vm2, %v214_v41, 0.0  ;;  %v145_v46 = vsel %vm144_vm7, %v379_v3, 0.0  ;;  %v122_v53 = vsel %vm96_vm2, %v121_v50, 0.0 }
  0xda   :  { %104 = vadd.xlane.f32.xlu0 %v103_v44  ;;  %136 = vadd.xlane.f32.xlu1 %v135_v39  ;;  %v146_v48 = vmul.f32 %v145_v46, %v80_v31 }
  0xdc   :  { %v149_v47 = vpop.permute.xlu1 %148 }
  0xdd   :  { %vm150_vm8 = vcmp.eq.s32.totalorder %v74_v24, %v149_v47 }
  0xde   :  { %92 = vadd.xlane.f32.xlu1 %v91_v49  ;;  %v151_v51 = vsel %vm150_vm8, %v379_v3, 0.0 }
  0xdf   :  { %v152_v52 = vmul.f32 %v151_v51, %v88_v27 }
  0xe1   :  { %v153_v54 = vadd.f32 %v152_v52, %v146_v48 }
  0xe2   :  { %123 = vadd.xlane.f32.xlu1 %v122_v53 }
  0xe3   :  { %v154_v55 = vsel %vm128_vm1, %v153_v54, 0.0 }
  0xe4   :  { %155 = vadd.xlane.f32.xlu0 %v154_v55 }
 0x163   :  { %v69_v56 = vpop.xlane.xlu1 %68 }
 0x164   :  { %215 = vlog2.f32 %v69_v56 }
 0x167   :  { %v105_v57 = vpop.xlane.xlu0 %104  ;;  %v137_v58 = vpop.xlane.xlu1 %136 }
 0x168   :  { %217 = vlog2.f32 %v105_v57 }
 0x169   :  { %219 = vlog2.f32 %v137_v58 }
 0x16b   :  { %v93_v61 = vpop.xlane.xlu1 %92 }
 0x16e   :  { %v216_v59 = vpop.eup %215 }
 0x16f   :  { %v71_v60 = vmul.f32 0.6931472, %v216_v59  ;;  %v124_v4 = vpop.xlane.xlu1 %123 }
 0x171   :  { %v72_v1 = vadd.f32 %v71_v60, %v388_v13  ;;  %v156_v8 = vpop.xlane.xlu0 %155 }
 0x172   :  { %v218_v62 = vpop.eup %217 }
 0x173   :  { %v220_v63 = vpop.eup %219  ;;  %v107_v0 = vmul.f32 0.6931472, %v218_v62  ;;  %v94_v6 = vsub.f32 %v72_v1, %v93_v61 }
 0x174   :  { %v139_v2 = vmul.f32 0.6931472, %v220_v63 }
 0x175   :  { %v108_v3 = vadd.f32 %v107_v0, %v395_v19 }
 0x176   :  { %v140_v5 = vadd.f32 %v139_v2, %v390_v14 }
 0x177   :  { %v125_v7 = vsub.f32 %v108_v3, %v124_v4 }
 0x178   :  { %v157_v10 = vsub.f32 %v140_v5, %v156_v8 }
 0x179   :  { %v126_v9 = vadd.f32 %v125_v7, %v94_v6 }
 0x17b   :  { %v158_v11 = vadd.f32 %v157_v10, %v126_v9 }
 0x17d   :  { %v160_v12 = vsel %vm159_vm9, %v158_v11, 0.0 }
 0x17e   :  { %161 = vadd.xlane.f32.xlu1 %v160_v12 }
 0x20b   :  { %v162_v15 = vpop.xlane.xlu1 %161 }
 0x20c   :  { %v163_v16 = vrot.slane %v162_v15, 4 }
 0x20e   :  { %v164_v17 = vadd.f32 %v163_v16, %v162_v15 }
 0x210   :  { %v165_v18 = vrot.slane %v164_v17, 2 }
 0x212   :  { %v166_v13 = vadd.f32 %v165_v18, %v164_v17 }
 0x214   :  { %v167_v20 = vrot.slane %v166_v13, 1 }
 0x216   :  { %v168_v21 = vadd.f32 %v167_v20, %v166_v13 }
 0x218   :  { %190 = vpush %v168_v21 }
 0x249   :  { %s191_s0 = spop %190 }
 0x24a   :  { %s172_s7 = smul.f32 0.125, %s191_s0 }
 0x24c   :  { %174 = sst [smem:[#allocation9]] %s172_s7 }
 0x24d   :  { %296 = shalt.err (!%p293_p12)
}
 0x24e   :  { %s312_s2 = smov [#allocation9]  }
 0x24f   :  { %182 = dma.smem_to_hbm %s312_s2, 16, %s432_s5, [#allocation5]  }
 0x250   :  { %301 = dma.done.wait [#allocation5], 16  }
 0x251   :  { %302 = vsyncadd [#allocation5], 4294967280 }
 0x252   :  { %186 = sfence }
 0x253   :  { %187 = vsyncpa [#allocation4], 1 }
 0x254   :  { %188 = vsyncpa [#allocation7], 1 }
 0x255   :  { %189 = vsyncpa [#allocation5], 1 }

</bundles_post_ra>
